<compile_context>
chip_gen: v6e
topology: v6e:2x2x1
jax: 0.10.0
libtpu: 0.0.40
codegen_flags: <defaults>
</compile_context>

<pallas_src>
import jax
import jax.numpy as jnp
from jax.experimental import pallas as pl
from jax.experimental.pallas import tpu as pltpu

_LANES = 128  # lane-dense last dim -> unmasked, full-width vector stores


def _round_up(a, m):
    return ((a + m - 1) // m) * m


def _identity_copy_kernel(x_ref, y_ref):
    # TODO(synk): if a subclass registers Bayesian children (conv/linear with
    # kl_loss), their compute + KL accumulation would be fused here; today
    # the child chain is empty so each block passes through unchanged.
    y_ref[...] = x_ref[...]


def _pick_block_bytes():
    """Generation-aware per-stream block size for the streaming copy.

    >= 2 MiB so the fixed ~0.35 us/grid-step overhead is amortized; capped at
    4 MiB so the 2-stream x 2-buffer footprint (4 * block = 16 MiB) stays
    comfortably inside v7x's 64 MiB/TC VMEM (v5e/v6e have 128 MiB).
    """
    target = 2 << 20
    try:
        vmem_cap = pltpu.get_tpu_info().vmem_capacity_bytes
        target = max(2 << 20, min(4 << 20, vmem_cap // 16))
    except Exception:
        pass
    return target


def _tiled_copy_2d(x2):
    """Lane-dense tiled Pallas copy of a (rows, 128) array (no padding)."""
    rows = int(x2.shape[0])
    itemsize = jnp.dtype(x2.dtype).itemsize
    row_bytes = _LANES * itemsize

    # Sublane granularity for the second-minor block dim (f32: 8, bf16: 16,
    # int8/fp8: 32); only relevant when the block does not span all rows.
    sub = max(8, 32 // max(1, itemsize))

    block_bytes_target = _pick_block_bytes()
    max_tile_rows = max(sub, (block_bytes_target // row_bytes) // sub * sub)

    if rows <= max_tile_rows:
        # Single block spanning the full row dim (satisfies the (8,128) rule
        # via the full-array-dim exception); one grid step, no ragged edge.
        tile_rows = rows
        grid_rows = 1
    else:
        # Balance block sizes so rows just above one block don't double the
        # step count; ragged final block handled by grid-boundary masking.
        num_blocks = pl.cdiv(rows, max_tile_rows)
        tile_rows = _round_up(pl.cdiv(rows, num_blocks), sub)
        grid_rows = pl.cdiv(rows, tile_rows)

    block_bytes = tile_rows * row_bytes
    # 2 streams (in + out) x 2 pipeline buffers, plus headroom.
    vmem_bytes = max(16 << 20, 4 * block_bytes + (4 << 20))
    moved_bytes = 2 * rows * _LANES * itemsize  # bytes the call actually moves

    return pl.pallas_call(
        _identity_copy_kernel,
        out_shape=jax.ShapeDtypeStruct(x2.shape, x2.dtype),
        grid=(grid_rows,),
        in_specs=[pl.BlockSpec((tile_rows, _LANES), lambda i: (i, 0))],
        out_specs=pl.BlockSpec((tile_rows, _LANES), lambda i: (i, 0)),
        compiler_params=pltpu.CompilerParams(
            dimension_semantics=("parallel",),
            vmem_limit_bytes=vmem_bytes,
        ),
        cost_estimate=pl.CostEstimate(
            flops=0,
            transcendentals=0,
            bytes_accessed=moved_bytes,
        ),
    )(x2)


def _lane_dense_identity(x):
    """Pallas identity copy of an arbitrary tensor via a lane-dense 2D view."""
    total = int(x.size)
    if total == 0:
        return x

    if total % _LANES == 0:
        # Common case (conv/linear-style tensors): exact (rows, 128) view,
        # no wrapper-side pad/slice -> exactly 2 * x.nbytes of HBM traffic.
        x2 = x.reshape(total // _LANES, _LANES)
        return _tiled_copy_2d(x2).reshape(x.shape)

    # TODO(synk): handle the <128-element ragged tail in-kernel (masked tail
    # store) so this pad + slice pair -- each a full extra HBM pass -- goes
    # away for non-128-aligned sizes.
    pad = _LANES - (total % _LANES)
    flat = jnp.pad(x.reshape(-1), (0, pad))
    y2 = _tiled_copy_2d(flat.reshape(-1, _LANES))
    return y2.reshape(-1)[:total].reshape(x.shape)


def module_wrapper_forward(x, materialize=False):
    """Pallas implementation of ModuleWrapper.forward: returns (x, kl).

    materialize=False (default, fastest): the empty child chain is a pure
    identity, so x is returned as-is and kl is a constant -- no kernel
    launch, no HBM traffic.
    materialize=True: run the lane-dense tiled Pallas copy (fusion skeleton
    for future Bayesian children).
    """
    # KL accumulation over zero submodules that define kl_loss -> 0.0,
    # produced on the wrapper side (no extra SMEM output stream).
    kl = jnp.zeros((), jnp.float32)
    if materialize:
        return _lane_dense_identity(x), kl
    return x, kl


if __name__ == "__main__":
    key = jax.random.PRNGKey(0)
    # Small NCHW input consistent with a conv-style BNN pipeline.
    x = jax.random.normal(key, (2, 4, 16, 16), dtype=jnp.float32)

    # Fast path: exact module semantics with zero kernel work.
    y_fast, kl_fast = module_wrapper_forward(x)

    # Kernel path: lane-dense tiled Pallas identity (fusion skeleton).
    y, kl = module_wrapper_forward(x, materialize=True)
    y = jax.block_until_ready(y)
    kl = jax.block_until_ready(kl)

    # Check exact forward semantics: identity output, zero KL.
    assert y.shape == x.shape and y.dtype == x.dtype
    assert bool(jnp.all(y == x))
    assert float(kl) == 0.0
    assert bool(jnp.all(y_fast == x)) and float(kl_fast) == 0.0

    print("KERNEL_OK")
</pallas_src>

<mosaic_0001>
module attributes {stable_mosaic.version = 11 : i64} {
  func.func @_identity_copy_kernel(%arg0: i32, %arg1: memref<16x128xf32, #tpu.memory_space<vmem>>, %arg2: memref<16x128xf32, #tpu.memory_space<vmem>>) attributes {dimension_semantics = [#tpu.dimension_semantics<parallel>], iteration_bounds = array<i64: 1>, scalar_prefetch = 0 : i64, scratch_operands = 0 : i64, tpu.core_type = #tpu.core_type<tc>, window_params = [{transform_indices = @transform_0, window_bounds = array<i64: 16, 128>}, {transform_indices = @transform_1, window_bounds = array<i64: 16, 128>}]} {
    %c0 = arith.constant 0 : index
    %c0_0 = arith.constant 0 : index
    %0 = vector.load %arg1[%c0, %c0_0] : memref<16x128xf32, #tpu.memory_space<vmem>>, vector<16x128xf32>
    %c0_1 = arith.constant 0 : index
    %c0_2 = arith.constant 0 : index
    %1 = vector.load %arg2[%c0_1, %c0_2] : memref<16x128xf32, #tpu.memory_space<vmem>>, vector<16x128xf32>
    tpu.vector_store %arg2[%c0_1, %c0_2], %0 {strides = array<i32>} : memref<16x128xf32, #tpu.memory_space<vmem>>, vector<16x128xf32>,
    return
  }
  func.func @transform_0(%arg0: i32) -> (i32, i32) {
    %c0_i32 = arith.constant 0 : i32
    %c0_i32_0 = arith.constant 0 : i32
    return %arg0, %c0_i32 : i32, i32
  }
  func.func @transform_1(%arg0: i32) -> (i32, i32) {
    %c0_i32 = arith.constant 0 : i32
    %c0_i32_0 = arith.constant 0 : i32
    return %arg0, %c0_i32 : i32, i32
  }
}

</mosaic_0001>

<bundles_post_ra>
// kernel: tpu_custom_call.1
= control target key start
LH: loop header
LB: loop body
LE: loop exit
PB: predicated region body
PF: predicated region fallthrough
CT: control target
= control target key end

     0   :  { %6 = vsyncpa [#allocation3], 0  ;;  %s112_s0 = inlined_call_operand.hbm [shape: f32[16,128], index: 0, kind: input, shape index: {}]   ;;  %s113_s1 = inlined_call_operand.hbm [shape: f32[16,128], index: 1, kind: output, shape index: {}]  }
   0x1   :  { %7 = vsyncpa [#allocation4], 0  ;;  %s92_s6 = smov [#allocation2]  }
   0x2   :  { %s13_s7 = sshll.u32 %s92_s6, 4  ;;  %s14_s7 = int_to_ptr.vmem [resolvable:$true] %s13_s7 }
   0x3   :  { %s56_s8 = scalar_lea.vmem %s14_s7, 256  ;;  %p61_p1 = scmp.lt.s32.totalorder %s14_s7, %s14_s7 }
   0x4   :  { %p57_p0 = scmp.ne.s32.totalorder %s14_s7, %s56_s8  ;;  %p62_p2 = scmp.lt.s32.totalorder %s56_s8, %s56_s8 }
   0x6   :  { %p63_p3 = por %p62_p2, %p61_p1 }
   0x8   :  { %p64_p4 = pnand %p63_p3, %p57_p0 }
   0xa   :  { %67 = shalt.err (!%p64_p4)
}
   0xb   :  { %s93_s9 = smov 128   ;;  %s94_s10 = smov 8  }
   0xc   :  { %19 = dma.hbm_to_vmem [thread:$0]  %s112_s0, 256, %s14_s7, [#allocation3], %s93_s9, %s93_s9, %s94_s10  }
   0xd   :  { %88 = dma.done.wait [#allocation3], 256  }
   0xe   :  { %89 = vsyncadd [#allocation3], 4294967040  ;;  %s95_s13 = smov [#allocation5]   ;;  %v23_v0 = vld [vmem:[#allocation2] sm:$0xff]  ;;  %v24_v1 = vld [vmem:[#allocation2 + $0x8] sm:$0xff] }
   0xf   :  { %s32_s14 = sshll.u32 %s95_s13, 4  ;;  %25 = vst [vmem:[#allocation5] sm:$0xff] %v23_v0  ;;  %26 = vst [vmem:[#allocation5 + $0x8] sm:$0xff] %v24_v1  ;;  %s33_s14 = int_to_ptr.vmem [resolvable:$true] %s32_s14 }
  0x10   :  { %s68_s15 = scalar_lea.vmem %s33_s14, 256  ;;  %p73_p6 = scmp.lt.s32.totalorder %s33_s14, %s33_s14 }
  0x11   :  { %p69_p5 = scmp.ne.s32.totalorder %s33_s14, %s68_s15  ;;  %p74_p7 = scmp.lt.s32.totalorder %s68_s15, %s68_s15 }
  0x13   :  { %p75_p8 = por %p74_p7, %p73_p6 }
  0x15   :  { %p76_p9 = pnand %p75_p8, %p69_p5 }
  0x17   :  { %79 = shalt.err (!%p76_p9)
}
  0x18   :  { %38 = dma.vmem_to_hbm [thread:$0]  %s33_s14, 256, %s113_s1, [#allocation4], %s93_s9, %s93_s9, %s94_s10  }
  0x19   :  { %90 = dma.done.wait [#allocation4], 256  }
  0x1a   :  { %91 = vsyncadd [#allocation4], 4294967040 }
  0x1b   :  { %42 = vsyncpa [#allocation3], 1 }
  0x1c   :  { %43 = vsyncpa [#allocation4], 1 }

</bundles_post_ra>
